<compile_context>
chip_gen: v5e
topology: v5e:2x2
jax: 0.10.0
libtpu: 0.0.40
codegen_flags: <defaults>
</compile_context>

<pallas_src>
import math
import random
import functools

import jax
import jax.numpy as jnp
from jax.experimental import pallas as pl
from jax.experimental.pallas import tpu as pltpu


def make_sinusoidal_pe(max_len: int, d_model: int, dtype=jnp.float32):
    """Deterministic init identical to the module's __init__ (pe squeezed to [max_len, d_model])."""
    position = jnp.arange(max_len, dtype=jnp.float32)[:, None]
    div_term = jnp.exp(
        jnp.arange(0, d_model, 2, dtype=jnp.float32) * (-math.log(10000.0) / d_model)
    )
    pe = jnp.zeros((max_len, d_model), dtype=jnp.float32)
    pe = pe.at[:, 0::2].set(jnp.sin(position * div_term))
    pe = pe.at[:, 1::2].set(jnp.cos(position * div_term))
    return pe.astype(dtype)


# ----------------------------- kernels ------------------------------------ #

def _pe_add_kernel(x_ref, pe_ref, o_ref):
    # x_ref: (tB, tC), pe_ref: (1, tC) broadcast over the batch-row dim.
    o_ref[...] = (x_ref[...] + pe_ref[...]).astype(o_ref.dtype)


def _pe_add_dropout_kernel(x_ref, pe_ref, mask_ref, o_ref):
    # mask_ref holds 0 or 1/(1-p) already -> single VALU multiply, no divide.
    o_ref[...] = ((x_ref[...] + pe_ref[...]) * mask_ref[...]).astype(o_ref.dtype)


# ----------------------------- tiling helper ------------------------------- #

def _pick_tile(total: int, unit: int, target: int) -> int:
    """Largest multiple of `unit` that divides `total` and is <= target.
    Falls back to the full extent (always a legal block size) otherwise."""
    if total % unit != 0 or total <= target:
        return total
    best = unit  # unit divides total here
    t = unit
    while t <= target:
        if total % t == 0:
            best = t
        t += unit
    return best


# ----------------------------- wrapper ------------------------------------- #

def positional_encoding_forward(x, pe, shift, *, dropout_p=0.1, training=False, rng=None):
    """x: (B, S, D), pe: (max_len, D), shift: roll amount (python int or traced int)."""
    B, S, D = x.shape
    max_len = pe.shape[0]
    assert S <= max_len
    dtype = x.dtype

    # Rolled PE window computed wrapper-side: roll(pe, shift)[i] == pe2[start + i].
    start = (max_len - (shift % max_len)) % max_len
    pe2 = jnp.concatenate([pe, pe], axis=0)
    pe_win = jax.lax.dynamic_slice(pe2, (start, 0), (S, D)).astype(dtype)

    # Lane-dense flattening: identical reshape of every operand, so the
    # elementwise add/multiply is exact and the last dim is 128-aligned
    # whenever S*D is a multiple of 128.
    C = S * D
    x2 = x.reshape(B, C)
    pe_flat = pe_win.reshape(1, C)

    itemsize = jnp.dtype(dtype).itemsize
    target_block_bytes = 2 * 1024 * 1024          # ~2 MiB per x block
    max_lanes = max(128, target_block_bytes // (8 * itemsize))
    tC = _pick_tile(C, 128, max_lanes)
    max_rows = max(8, target_block_bytes // (tC * itemsize))
    tB = _pick_tile(B, 8, max_rows)
    grid = (B // tB, C // tC)

    x_spec = pl.BlockSpec((tB, tC), lambda i, j: (i, j))
    pe_spec = pl.BlockSpec((1, tC), lambda i, j: (0, j))
    out_spec = pl.BlockSpec((tB, tC), lambda i, j: (i, j))

    cparams = pltpu.CompilerParams(
        dimension_semantics=("parallel", "parallel"),
    )

    use_dropout = bool(training) and float(dropout_p) > 0.0
    if use_dropout:
        # TODO(synk): torch's dropout RNG stream is not reproduced bit-exactly;
        # a jax.random Bernoulli mask with the same keep prob / 1/(1-p) scaling is used.
        if rng is None:
            rng = jax.random.PRNGKey(0)
        keep_prob = 1.0 - float(dropout_p)
        if keep_prob <= 0.0:
            mask_flat = jnp.zeros((B, C), dtype=dtype)
        else:
            keep = jax.random.bernoulli(rng, keep_prob, (B, S, D))
            scale = jnp.asarray(1.0 / keep_prob, dtype)
            mask_flat = (keep.astype(dtype) * scale).reshape(B, C)

        out_flat = pl.pallas_call(
            _pe_add_dropout_kernel,
            out_shape=jax.ShapeDtypeStruct((B, C), dtype),
            grid=grid,
            in_specs=[x_spec, pe_spec, x_spec],
            out_specs=out_spec,
            input_output_aliases={0: 0},
            compiler_params=cparams,
        )(x2, pe_flat, mask_flat)
    else:
        out_flat = pl.pallas_call(
            _pe_add_kernel,
            out_shape=jax.ShapeDtypeStruct((B, C), dtype),
            grid=grid,
            in_specs=[x_spec, pe_spec],
            out_specs=out_spec,
            input_output_aliases={0: 0},
            compiler_params=cparams,
        )(x2, pe_flat)

    return out_flat.reshape(B, S, D)


# ----------------------------- demo / check -------------------------------- #

if __name__ == "__main__":
    # Small shapes consistent with the module: batch=2, seq=8, d_model=32, max_len=64.
    B, S, D, MAX_LEN = 2, 8, 32, 64
    DROPOUT_P = 0.1

    key = jax.random.PRNGKey(0)
    kx, kdrop = jax.random.split(key)
    x = jax.random.normal(kx, (B, S, D), dtype=jnp.float32)

    pe = make_sinusoidal_pe(MAX_LEN, D)          # "trainable" param, deterministic init

    random.seed(0)
    shift = random.randint(0, MAX_LEN)           # shape=True -> random roll in forward

    # Eval mode (dropout is identity) -- check against a pure-JAX reference.
    out = positional_encoding_forward(x, pe, shift, dropout_p=DROPOUT_P, training=False)
    out = jax.block_until_ready(out)

    ref = x + jnp.roll(pe, shift, axis=0)[:S][None, :, :]
    assert jnp.allclose(out, ref, atol=1e-5, rtol=1e-5), "mismatch vs reference (eval mode)"

    # Training mode (wrapper-generated dropout mask, in-kernel fused scale).
    out_train = positional_encoding_forward(
        x, pe, shift, dropout_p=DROPOUT_P, training=True, rng=kdrop
    )
    out_train = jax.block_until_ready(out_train)

    # Sanity: every element is either dropped (0) or ref scaled by 1/(1-p).
    scaled_ref = ref / (1.0 - DROPOUT_P)
    ok = jnp.all(
        jnp.isclose(out_train, 0.0, atol=1e-6)
        | jnp.isclose(out_train, scaled_ref, atol=1e-5, rtol=1e-5)
    )
    assert bool(ok), "training-mode dropout output inconsistent"

    print("KERNEL_OK")
</pallas_src>

<mosaic_0001>
module attributes {stable_mosaic.version = 11 : i64} {
  func.func @_pe_add_kernel(%arg0: i32, %arg1: i32, %arg2: memref<2x256xf32, #tpu.memory_space<vmem>>, %arg3: memref<1x256xf32, #tpu.memory_space<vmem>>, %arg4: memref<2x256xf32, #tpu.memory_space<vmem>>) attributes {dimension_semantics = [#tpu.dimension_semantics<parallel>, #tpu.dimension_semantics<parallel>], iteration_bounds = array<i64: 1, 1>, scalar_prefetch = 0 : i64, scratch_operands = 0 : i64, tpu.core_type = #tpu.core_type<tc>, window_params = [{transform_indices = @transform_0, window_bounds = array<i64: 2, 256>}, {transform_indices = @transform_1, window_bounds = array<i64: 1, 256>}, {transform_indices = @transform_2, window_bounds = array<i64: 2, 256>}]} {
    %c0 = arith.constant 0 : index
    %c0_0 = arith.constant 0 : index
    %0 = vector.load %arg2[%c0, %c0_0] : memref<2x256xf32, #tpu.memory_space<vmem>>, vector<2x256xf32>
    %c0_1 = arith.constant 0 : index
    %c0_2 = arith.constant 0 : index
    %1 = vector.load %arg3[%c0_1, %c0_2] : memref<1x256xf32, #tpu.memory_space<vmem>>, vector<1x256xf32>
    %2 = vector.broadcast %1 : vector<1x256xf32> to vector<2x256xf32>
    %3 = arith.addf %0, %2 : vector<2x256xf32>
    %c0_3 = arith.constant 0 : index
    %c0_4 = arith.constant 0 : index
    %4 = vector.load %arg4[%c0_3, %c0_4] : memref<2x256xf32, #tpu.memory_space<vmem>>, vector<2x256xf32>
    tpu.vector_store %arg4[%c0_3, %c0_4], %3 {strides = array<i32>} : memref<2x256xf32, #tpu.memory_space<vmem>>, vector<2x256xf32>,
    return
  }
  func.func @transform_0(%arg0: i32, %arg1: i32) -> (i32, i32) {
    %c0_i32 = arith.constant 0 : i32
    return %arg0, %arg1 : i32, i32
  }
  func.func @transform_1(%arg0: i32, %arg1: i32) -> (i32, i32) {
    %c0_i32 = arith.constant 0 : i32
    %c0_i32_0 = arith.constant 0 : i32
    return %c0_i32, %arg1 : i32, i32
  }
  func.func @transform_2(%arg0: i32, %arg1: i32) -> (i32, i32) {
    %c0_i32 = arith.constant 0 : i32
    return %arg0, %arg1 : i32, i32
  }
}

</mosaic_0001>

<bundles_post_ra>
// kernel: tpu_custom_call.1
= control target key start
LH: loop header
LB: loop body
LE: loop exit
PB: predicated region body
PF: predicated region fallthrough
CT: control target
= control target key end

     0   :  { %7 = vsyncpa [#allocation3], 0  ;;  %s134_s0 = inlined_call_operand.hbm [shape: f32[2,256], index: 0, kind: input, shape index: {}, may-alias: {0,2}]   ;;  %s135_s1 = inlined_call_operand.vmem [shape: f32[1,256], index: 1, kind: input, shape index: {}]   ;;  %s136_s2 = inlined_call_operand.hbm [shape: f32[2,256], index: 2, kind: output, shape index: {}, may-alias: {0,2}]  }
   0x1   :  { %8 = vsyncpa [#allocation4], 0  ;;  %s14_s11 = sshll.u32 %s134_s0, 4  ;;  %s108_s12 = smov [#allocation2]   ;;  %s15_s11 = int_to_ptr.hbm [resolvable:$true] %s14_s11 }
   0x2   :  { %s16_s13 = sshll.u32 %s108_s12, 4  ;;  %s17_s13 = int_to_ptr.vmem [resolvable:$true] %s16_s13 }
   0x3   :  { %19 = dma.hbm_to_vmem [thread:$0]  %s15_s11, 64, %s17_s13, [#allocation3]  }
   0x4   :  { %104 = dma.done.wait [#allocation3], 64  }
   0x5   :  { %105 = vsyncadd [#allocation3], 4294967232  ;;  %v27_v0 = vld [vmem:[%s135_s1] sm:$0x3]  ;;  %vm32_vm0 = vcmask 1041408   ;;  %s109_s16 = smov [#allocation5]  }
   0x6   :  { %v29_v1 = vperm.slane %v27_v0, 0  ;;  %v30_v2 = vperm.slane %v27_v0, 1  ;;  %v26_v3 = vld [vmem:[#allocation2] sm:$0xf]  ;;  %s42_s17 = sshll.u32 %s109_s16, 4  ;;  %s44_s19 = sshll.u32 %s136_s2, 4  ;;  %s43_s17 = int_to_ptr.vmem [resolvable:$true] %s42_s17  ;;  %s45_s19 = int_to_ptr.hbm [resolvable:$true] %s44_s19 }
   0x8   :  { %v31_v4 = vrot.slane %v30_v2, 6 }
   0xa   :  { %v33_v5 = vsel %vm32_vm0, %v29_v1, %v31_v4 }
   0xb   :  { %v35_v6 = vadd.f32 %v33_v5, %v26_v3 }
   0xd   :  { %36 = vst [vmem:[#allocation5] sm:$0xf] %v35_v6 }
   0xe   :  { %47 = dma.vmem_to_hbm [thread:$0]  %s43_s17, 64, %s45_s19, [#allocation4]  }
   0xf   :  { %106 = dma.done.wait [#allocation4], 64  }
  0x10   :  { %107 = vsyncadd [#allocation4], 4294967232 }
  0x11   :  { %52 = vsyncpa [#allocation3], 1 }
  0x12   :  { %53 = vsyncpa [#allocation4], 1 }

</bundles_post_ra>
